<compile_context>
chip_gen: v6e
topology: v6e:2x2x1
jax: 0.10.0
libtpu: 0.0.40
codegen_flags: <defaults>
</compile_context>

<pallas_src>
import functools

import jax
import jax.numpy as jnp
from jax.experimental import pallas as pl
from jax.experimental.pallas import tpu as pltpu

_LANE = 128


def _lintrans_kernel(xa_ref, wa_ref, packed_ref):
    xa = xa_ref[...].astype(jnp.float32)   # (N, D_in + 1), last column is ones
    wa = wa_ref[...].astype(jnp.float32)   # (D_in + 1, D_out), last row is bias

    # --- folded linear stack incl. bias (single MXU matmul) ---
    h = jnp.dot(xa, wa, preferred_element_type=jnp.float32)

    n, d_out = h.shape

    # --- scale(): per-row min-max normalization ---
    zmax = jnp.max(h, axis=1, keepdims=True)
    zmin = jnp.min(h, axis=1, keepdims=True)
    # approx vrcp: row-wide multiplicative error cancels in the L2 normalize.
    inv_range = pl.reciprocal(zmax - zmin, approx=True)
    z = (h - zmin) * inv_range

    # --- F.normalize(p=2, dim=1, eps=1e-12): rsqrt + multiply ---
    sumsq = jnp.sum(z * z, axis=1, keepdims=True)
    z = z * jax.lax.rsqrt(jnp.maximum(sumsq, 1e-24))  # sqrt(1e-24) == 1e-12 clamp

    # --- dot_product_decode: sigmoid(ZZ^T - 1/(ZZ^T)) ---
    # Contract last dim vs. last dim on the MXU (no explicit transpose of z).
    zz = jax.lax.dot_general(
        z, z,
        dimension_numbers=(((1,), (1,)), ((), ())),
        preferred_element_type=jnp.float32,
    )
    pre = jax.nn.sigmoid(zz - pl.reciprocal(zz))  # exact: 1e-5 tol near zz==1

    # --- single lane-dense (N, 128k) writeback: [ z | pre | zero pad ] ---
    pad = packed_ref.shape[1] - d_out - n
    packed = jnp.concatenate(
        [z, pre, jnp.zeros((n, pad), jnp.float32)], axis=1)
    packed_ref[...] = packed.astype(packed_ref.dtype)


@jax.jit
def lintrans_forward(x, weights_t, biases):
    """x: (N, dims[0]); weights_t[i]: (dims[i], dims[i+1]); biases[i]: (dims[i+1],)."""
    n = x.shape[0]
    d_out = weights_t[-1].shape[1]

    # Fold the Linear stack into one affine map (no nonlinearity between layers):
    # h = (((x W0 + b0) W1 + b1) ...) == x (W0 W1 ...) + (b0 W1 + b1) ...
    w_fold = weights_t[0].astype(jnp.float32)
    b_fold = biases[0].astype(jnp.float32)
    for w, b in zip(weights_t[1:], biases[1:]):
        w_fold = w_fold @ w
        b_fold = b_fold @ w + b

    # Fold the bias into the weight: augment x with a ones column, append the
    # bias as the final row of the weight -> 2 kernel inputs instead of 3.
    x_aug = jnp.concatenate(
        [x.astype(jnp.float32), jnp.ones((n, 1), jnp.float32)], axis=1)
    w_aug = jnp.concatenate([w_fold, b_fold.reshape(1, d_out)], axis=0)

    lane_w = max(_LANE, pl.cdiv(d_out + n, _LANE) * _LANE)
    vmem_spec = pl.BlockSpec(memory_space=pltpu.MemorySpace.VMEM)

    packed = pl.pallas_call(
        _lintrans_kernel,
        out_shape=jax.ShapeDtypeStruct((n, lane_w), jnp.float32),
        in_specs=[vmem_spec, vmem_spec],
        out_specs=vmem_spec,
    )(x_aug, w_aug)

    out = packed[:, :d_out]
    pre = packed[:, d_out:d_out + n]
    return out, pre


def lintrans_reference(x, weights_t, biases):
    h = x.astype(jnp.float32)
    for w, b in zip(weights_t, biases):
        h = h @ w + b
    zmax = jnp.max(h, axis=1, keepdims=True)
    zmin = jnp.min(h, axis=1, keepdims=True)
    z = (h - zmin) / (zmax - zmin)
    norm = jnp.sqrt(jnp.sum(z * z, axis=1, keepdims=True))
    z = z / jnp.maximum(norm, 1e-12)
    zz = z @ z.T
    return z, jax.nn.sigmoid(zz - 1.0 / zz)


if __name__ == "__main__":
    # Model config: layers=2, dims=[32, 16, 8]; batch N=8.
    layers = 2
    dims = [32, 16, 8]
    n = 8

    key = jax.random.PRNGKey(0)
    keys = jax.random.split(key, 1 + 2 * layers)

    x = jax.random.normal(keys[0], (n, dims[0]), dtype=jnp.float32)

    # Deterministic init mimicking nn.Linear defaults: U(-1/sqrt(fan_in), 1/sqrt(fan_in)).
    weights_t, biases = [], []
    for i in range(layers):
        fan_in = dims[i]
        bound = 1.0 / (fan_in ** 0.5)
        w = jax.random.uniform(keys[1 + 2 * i], (dims[i], dims[i + 1]),
                               minval=-bound, maxval=bound, dtype=jnp.float32)
        b = jax.random.uniform(keys[2 + 2 * i], (dims[i + 1],),
                               minval=-bound, maxval=bound, dtype=jnp.float32)
        weights_t.append(w)
        biases.append(b)

    weights_t = tuple(weights_t)
    biases = tuple(biases)

    out, pre = lintrans_forward(x, weights_t, biases)
    out, pre = jax.block_until_ready((out, pre))

    out_ref, pre_ref = lintrans_reference(x, weights_t, biases)
    assert jnp.allclose(out, out_ref, atol=1e-5, rtol=1e-5), "out mismatch"
    assert jnp.allclose(pre, pre_ref, atol=1e-5, rtol=1e-5), "pre mismatch"

    print("KERNEL_OK")
</pallas_src>

<mosaic_0001>
module attributes {stable_mosaic.version = 11 : i64} {
  func.func @_lintrans_kernel(%arg0: memref<8x33xf32, #tpu.memory_space<vmem>>, %arg1: memref<33x8xf32, #tpu.memory_space<vmem>>, %arg2: memref<8x128xf32, #tpu.memory_space<vmem>>) attributes {dimension_semantics = [], scalar_prefetch = 0 : i64, scratch_operands = 0 : i64, tpu.core_type = #tpu.core_type<tc>} {
    %c0 = arith.constant 0 : index
    %c0_0 = arith.constant 0 : index
    %0 = vector.load %arg0[%c0, %c0_0] : memref<8x33xf32, #tpu.memory_space<vmem>>, vector<8x33xf32>
    %c0_1 = arith.constant 0 : index
    %c0_2 = arith.constant 0 : index
    %1 = vector.load %arg1[%c0_1, %c0_2] : memref<33x8xf32, #tpu.memory_space<vmem>>, vector<33x8xf32>
    %cst = arith.constant dense<0.000000e+00> : vector<8x8xf32>
    %2 = tpu.matmul %0, %1, %cst {dimension_numbers = #tpu.dot_dimension_numbers<[1], [0], [0], [1], [0, 0, 1, 1], [], []>} : vector<8x33xf32>, vector<33x8xf32>, vector<8x8xf32> -> vector<8x8xf32>
    %cst_3 = arith.constant dense<0xFF800000> : vector<8xf32>
    %3 = vector.multi_reduction <maximumf>, %2, %cst_3 [1] : vector<8x8xf32> to vector<8xf32>
    %4 = vector.shape_cast %3 : vector<8xf32> to vector<8x1xf32>
    %cst_4 = arith.constant dense<0x7F800000> : vector<8xf32>
    %5 = vector.multi_reduction <minimumf>, %2, %cst_4 [1] : vector<8x8xf32> to vector<8xf32>
    %6 = vector.shape_cast %5 : vector<8xf32> to vector<8x1xf32>
    %7 = arith.subf %4, %6 : vector<8x1xf32>
    %8 = tpu.reciprocal %7 {approx = true} : vector<8x1xf32> -> vector<8x1xf32>
    %9 = vector.broadcast %6 : vector<8x1xf32> to vector<8x8xf32>
    %10 = arith.subf %2, %9 : vector<8x8xf32>
    %11 = vector.broadcast %8 : vector<8x1xf32> to vector<8x8xf32>
    %12 = arith.mulf %10, %11 : vector<8x8xf32>
    %13 = arith.mulf %12, %12 : vector<8x8xf32>
    %cst_5 = arith.constant dense<0.000000e+00> : vector<8xf32>
    %14 = vector.multi_reduction <add>, %13, %cst_5 [1] : vector<8x8xf32> to vector<8xf32>
    %15 = vector.shape_cast %14 : vector<8xf32> to vector<8x1xf32>
    %cst_6 = arith.constant 1.000000e-24 : f32
    %16 = vector.broadcast %cst_6 : f32 to vector<8x1xf32>
    %17 = arith.maximumf %15, %16 : vector<8x1xf32>
    %18 = math.rsqrt %17 : vector<8x1xf32>
    %19 = vector.broadcast %18 : vector<8x1xf32> to vector<8x8xf32>
    %20 = arith.mulf %12, %19 : vector<8x8xf32>
    %cst_7 = arith.constant dense<0.000000e+00> : vector<8x8xf32>
    %21 = tpu.matmul %20, %20, %cst_7 {dimension_numbers = #tpu.dot_dimension_numbers<[1], [1], [0], [0], [0, 0, 1, 0], [], []>} : vector<8x8xf32>, vector<8x8xf32>, vector<8x8xf32> -> vector<8x8xf32>
    %22 = tpu.reciprocal %21 : vector<8x8xf32> -> vector<8x8xf32>
    %23 = arith.subf %21, %22 : vector<8x8xf32>
    %24 = arith.negf %23 : vector<8x8xf32>
    %25 = math.exp %24 : vector<8x8xf32>
    %cst_8 = arith.constant 1.000000e+00 : f32
    %26 = vector.broadcast %cst_8 : f32 to vector<8x8xf32>
    %27 = arith.addf %26, %25 : vector<8x8xf32>
    %28 = arith.divf %26, %27 : vector<8x8xf32>
    %cst_9 = arith.constant 0.000000e+00 : f32
    %29 = vector.broadcast %cst_9 : f32 to vector<8x112xf32>
    %30 = tpu.concatenate %20, %28, %29 in 1 : vector<8x8xf32>, vector<8x8xf32>, vector<8x112xf32> -> vector<8x128xf32>
    %c0_10 = arith.constant 0 : index
    %c0_11 = arith.constant 0 : index
    %31 = vector.load %arg2[%c0_10, %c0_11] : memref<8x128xf32, #tpu.memory_space<vmem>>, vector<8x128xf32>
    tpu.vector_store %arg2[%c0_10, %c0_11], %30 {strides = array<i32>} : memref<8x128xf32, #tpu.memory_space<vmem>>, vector<8x128xf32>,
    return
  }
}

</mosaic_0001>

<bundles_post_ra>
// kernel: lintrans_forward.1
= control target key start
LH: loop header
LB: loop body
LE: loop exit
PB: predicated region body
PF: predicated region fallthrough
CT: control target
= control target key end

     0   :  { %vm21_vm0 = vcmask 1040384   ;;  %v250_v0 = vmov 0.0   ;;  %vm251_vm1 = vmmov 0   ;;  %vm17_vm2 = vcmask 269312   ;;  %s295_s1 = inlined_call_operand.vmem [shape: f32[33,8], index: 1, kind: input, shape index: {}]   ;;  %s296_s0 = inlined_call_operand.vmem [shape: f32[8,33], index: 0, kind: input, shape index: {}]   ;;  %s297_s2 = inlined_call_operand.vmem [shape: f32[8,128], index: 2, kind: output, shape index: {}]  }
   0x1   :  { %219 = vmatprep.subr.mxu0 %v250_v0  ;;  %v16_v1 = vld [vmem:[%s295_s1 + $0x20] sm:$0x1]  ;;  %v15_v2 = vld [vmem:[%s295_s1 + $0x18] sm:$0xff]  ;;  %229 = vmatprep.mubr.msk.f32.mxu0 %vm251_vm1, %v250_v0  ;;  %v14_v3 = vld [vmem:[%s295_s1 + $0x10] sm:$0xff]  ;;  %vm95_vm3 = vcmask 64512   ;;  %vm199_vm4 = vcmask 130048  }
   0x2   :  { %220 = vmatpush3.msk.msra.mxu0 %vm21_vm0, %v16_v1  ;;  %232 = vmatprep.subr.mxu1 %v250_v0  ;;  %v13_v4 = vld [vmem:[%s295_s1 + $0x8] sm:$0xff]  ;;  %v12_v5 = vld [vmem:[%s295_s1] sm:$0xff] }
   0x3   :  { %221 = vmatprep.subr.mxu0 %v250_v0  ;;  %234 = vmatprep.mubr.msk.f32.mxu1 %vm251_vm1, %v250_v0  ;;  %v11_v6 = vld [vmem:[%s296_s0] sm:$0xff]  ;;  %s252_s0 = smov 8  }
   0x4   :  { %222 = vmatpush3.msra.mxu0 %v15_v2 }
   0x5   :  { %223 = vmatprep.subr.mxu0 %v250_v0 }
   0x6   :  { %224 = vmatpush3.msra.mxu0 %v14_v3 }
   0x7   :  { %225 = vmatprep.subr.mxu0 %v250_v0 }
   0x8   :  { %226 = vmatpush3.msra.mxu0 %v13_v4 }
   0x9   :  { %227 = vmatprep.subr.mxu0 %v250_v0 }
   0xa   :  { %228 = vmatpush3.msra.mxu0 %v12_v5 }
   0xb   :  { %230 = vmatmul.mubr.msk.f32.vlgmr.msra.gmra.mxu0 %vm17_vm2, %v11_v6 }
  0xcb   :  { %v91_v7 = vpop.f32.mrf.mxu0 }
  0xcc   :  { %v96_v8 = vsel %vm95_vm3, %v91_v7, -inf  ;;  %v99_v10 = vsel %vm95_vm3, %v91_v7, inf }
  0xcd   :  { %97 = vmax.xlane.f32.xlu0 %v96_v8  ;;  %v231_v9 = vpop.f32.mrf.mxu0 }
  0xd1   :  { %100 = vmin.xlane.f32.xlu0 %v99_v10 }
 0x156   :  { %v98_v11 = vpop.xlane.xlu0 %97 }
 0x15a   :  { %v101_v12 = vpop.xlane.xlu0 %100 }
 0x15b   :  { %v102_v13 = vsub.f32 %v98_v11, %v101_v12  ;;  %v104_v14 = vsub.f32 %v91_v7, %v101_v12 }
 0x15d   :  { %240 = vrcp.f32 %v102_v13 }
 0x16a   :  { %v241_v15 = vpop.eup %240 }
 0x16b   :  { %v105_v16 = vmul.f32 %v241_v15, %v104_v14 }
 0x16d   :  { %v106_v17 = vmul.f32 %v105_v16, %v105_v16 }
 0x16f   :  { %v107_v18 = vsel %vm95_vm3, %v106_v17, 0.0 }
 0x170   :  { %108 = vadd.xlane.f32.xlu1 %v107_v18 }
 0x1f9   :  { %v109_v19 = vpop.xlane.xlu1 %108 }
 0x1fa   :  { %v110_v20 = vmax.f32 %v109_v19, 1e-24 }
 0x1fc   :  { %242 = vrsqrt.f32 %v110_v20 }
 0x209   :  { %v243_v21 = vpop.eup %242 }
 0x20a   :  { %v112_v22 = vmul.f32 %v243_v21, %v105_v16 }
 0x20c   :  { %233 = vmatpush3.xpose.msk.msra.mxu1 %vm95_vm3, %v112_v22 }
 0x20f   :  { %235 = vmatmul.mubr.msk.f32.vlgmr.msra.gmra.mxu1 %vm95_vm3, %v112_v22 }
 0x2cf   :  { %v182_v23 = vpop.f32.mrf.mxu1 }
 0x2d0   :  { %244 = vrcp.f32 %v182_v23 }
 0x2d1   :  { %v236_v24 = vpop.f32.mrf.mxu1 }
 0x2dd   :  { %v245_v25 = vpop.eup %244 }
 0x2de   :  { %v187_v26 = vsub.f32 %v182_v23, %v245_v25 }
 0x2e0   :  { %v210_v27 = vmul.f32 -1.442695, %v187_v26 }
 0x2e2   :  { %246 = vpow2.f32 %v210_v27 }
 0x2ef   :  { %v247_v28 = vpop.eup %246 }
 0x2f0   :  { %v191_v29 = vadd.f32 1.0, %v247_v28 }
 0x2f2   :  { %248 = vrcp.f32 %v191_v29 }
 0x2ff   :  { %v249_v30 = vpop.eup %248 }
 0x300   :  { %195 = vrot.lane.b32.xlu1 %v249_v30, %s252_s0 }
 0x372   :  { %v196_v31 = vpop.permute.xlu1 %195 }
 0x373   :  { %v198_v32 = vsel %vm95_vm3, %v112_v22, %v196_v31 }
 0x374   :  { %v200_v33 = vsel %vm199_vm4, %v198_v32, 0.0 }
 0x375   :  { %201 = vst [vmem:[%s297_s2] sm:$0xff] %v200_v33 }

</bundles_post_ra>
